<compile_context>
chip_gen: v7x
topology: tpu7x:2x2x1
jax: 0.10.0
libtpu: 0.0.40
codegen_flags: <defaults>
</compile_context>

<pallas_src>
import jax
import jax.numpy as jnp
from jax import lax
from jax.experimental import pallas as pl
from jax.experimental.pallas import tpu as pltpu


def _make_block_kernel(H, W):
    """Build the fused depthwise+pointwise kernel for a fixed (H, W)."""
    HW = H * W

    def kernel(xf_ref, dw_ref, b1_ref, pw_ref, b2_ref, o_ref):
        # xf_ref : (1, C, Lpad)  flattened input, zero-padded:
        #                        [ W+1 zeros | H*W image | >= W+1 zeros ]
        # dw_ref : (C, 9)        depthwise 3x3 weights * BN1 scale, tap t = ky*3+kx
        # b1_ref : (C, 1)        folded BN1 bias
        # pw_ref : (Co, C)       pointwise 1x1 weights * BN2 scale
        # b2_ref : (Co, 1)       folded BN2 bias
        # o_ref  : (1, Co, H*W)  NCHW-compatible flat output

        # Edge masks for taps that cross the left/right image border.
        # Lane index p = y*W + x  ->  column x = p % W.
        col = lax.broadcasted_iota(jnp.int32, (1, HW), 1) % W
        not_left = col != 0            # kill dx = -1 taps at x == 0
        not_right = col != (W - 1)     # kill dx = +1 taps at x == W - 1

        # ---- depthwise 3x3: 9 shifted windows, sliced directly from the ref ----
        acc = None
        for ky in range(3):
            for kx in range(3):
                dx = kx - 1
                s = 1 + ky * W + dx                               # static flat offset
                v = xf_ref[0, :, s:s + HW].astype(jnp.float32)    # (C, HW)
                if dx == -1:
                    v = jnp.where(not_left, v, 0.0)
                elif dx == 1:
                    v = jnp.where(not_right, v, 0.0)
                t = ky * 3 + kx
                w = dw_ref[:, t:t + 1].astype(jnp.float32)        # (C, 1)
                term = v * w
                acc = term if acc is None else acc + term         # init from tap 0

        # ---- BN1 bias + ReLU (scale already folded into dw weights) ----
        h1 = jnp.maximum(acc + b1_ref[...].astype(jnp.float32), 0.0)      # (C, HW)

        # ---- pointwise 1x1 conv == (Co, C) @ (C, HW) matmul (MXU), lane-dense ----
        y = jnp.dot(pw_ref[...].astype(jnp.float32), h1,
                    preferred_element_type=jnp.float32)                   # (Co, HW)

        # ---- BN2 bias + ReLU, lane-dense unmasked store ----
        y = jnp.maximum(y + b2_ref[...].astype(jnp.float32), 0.0)
        o_ref[0] = y.astype(o_ref.dtype)

    return kernel


def block_forward(x_nchw, params, eps=1e-5):
    """Forward pass of Block. Input and output are NCHW (PyTorch layout)."""
    dw_w = params["dw_w"]          # (3, 3, C)  depthwise kernel (per channel)
    pw_w = params["pw_w"]          # (C, Co)    pointwise kernel
    g1, bt1, m1, v1 = params["bn1"]
    g2, bt2, m2, v2 = params["bn2"]

    N, C, H, W = x_nchw.shape
    Co = pw_w.shape[1]
    HW = H * W

    # Fold eval-mode BatchNorm into scale/bias, then fold the scales into the
    # conv weights (host-side glue) so the kernel only does bias + ReLU.
    s1 = g1 / jnp.sqrt(v1 + eps)
    b1 = bt1 - m1 * s1
    s2 = g2 / jnp.sqrt(v2 + eps)
    b2 = bt2 - m2 * s2

    dw_cs = (dw_w.reshape(9, C) * s1[None, :]).T        # (C, 9),  BN1 scale folded
    pw_s = (pw_w * s2[None, :]).T                       # (Co, C), BN2 scale folded
    b1r = b1.reshape(C, 1)
    b2r = b2.reshape(Co, 1)

    # Flat zero-padded input: one jnp.pad over the (free) contiguous reshape.
    # Left pad W+1 covers the top halo row + the dx=-1 offset; right pad covers
    # the bottom halo row + the dx=+1 overshoot; total rounded to 128 lanes.
    pad_l = W + 1
    lpad = ((pad_l + HW + W + 1 + 127) // 128) * 128
    x_flat = jnp.pad(x_nchw.reshape(N, C, HW),
                     ((0, 0), (0, 0), (pad_l, lpad - pad_l - HW)))

    out_flat = pl.pallas_call(
        _make_block_kernel(H, W),
        out_shape=jax.ShapeDtypeStruct((N, Co, HW), x_nchw.dtype),
        grid=(N,),
        in_specs=[
            pl.BlockSpec((1, C, lpad), lambda n: (n, 0, 0)),
            pl.BlockSpec((C, 9), lambda n: (0, 0)),
            pl.BlockSpec((C, 1), lambda n: (0, 0)),
            pl.BlockSpec((Co, C), lambda n: (0, 0)),
            pl.BlockSpec((Co, 1), lambda n: (0, 0)),
        ],
        out_specs=pl.BlockSpec((1, Co, HW), lambda n: (n, 0, 0)),
        compiler_params=pltpu.CompilerParams(
            dimension_semantics=("parallel",)),   # batch axis -> v7x 2-TC sharding
    )(x_flat, dw_cs, b1r, pw_s, b2r)

    # (N, Co, H*W) -> (N, Co, H, W): contiguous reshape, no data movement.
    return out_flat.reshape(N, Co, H, W)


def _reference_forward(x_nchw, params, eps=1e-5):
    """Pure-JAX reference (lax.conv) for correctness checking."""
    dw_w = params["dw_w"]
    pw_w = params["pw_w"]
    g1, bt1, m1, v1 = params["bn1"]
    g2, bt2, m2, v2 = params["bn2"]
    C = dw_w.shape[2]
    Co = pw_w.shape[1]

    x = jnp.transpose(x_nchw, (0, 2, 3, 1)).astype(jnp.float32)  # NHWC
    dn = ("NHWC", "HWIO", "NHWC")
    # depthwise: HWIO with I = C/groups = 1, O = C
    y = lax.conv_general_dilated(x, dw_w.reshape(3, 3, 1, C).astype(jnp.float32),
                                 window_strides=(1, 1), padding="SAME",
                                 dimension_numbers=dn, feature_group_count=C)
    y = (y - m1) / jnp.sqrt(v1 + eps) * g1 + bt1
    y = jnp.maximum(y, 0.0)
    y = lax.conv_general_dilated(y, pw_w.reshape(1, 1, C, Co).astype(jnp.float32),
                                 window_strides=(1, 1), padding="VALID",
                                 dimension_numbers=dn)
    y = (y - m2) / jnp.sqrt(v2 + eps) * g2 + bt2
    y = jnp.maximum(y, 0.0)
    return jnp.transpose(y, (0, 3, 1, 2))


if __name__ == "__main__":
    # Small shapes consistent with the module: N=2, in_planes=4, out_planes=8,
    # spatial 16x16, stride=1.
    N, C, Co, H, W = 2, 4, 8, 16, 16

    key = jax.random.PRNGKey(0)
    k = jax.random.split(key, 8)

    x = jax.random.normal(k[0], (N, C, H, W), dtype=jnp.float32)

    params = {
        "dw_w": jax.random.normal(k[1], (3, 3, C), dtype=jnp.float32) * 0.3,
        "pw_w": jax.random.normal(k[2], (C, Co), dtype=jnp.float32) * 0.3,
        "bn1": (
            1.0 + 0.1 * jax.random.normal(k[3], (C,), dtype=jnp.float32),     # gamma
            0.1 * jax.random.normal(k[4], (C,), dtype=jnp.float32),           # beta
            0.05 * jax.random.normal(k[5], (C,), dtype=jnp.float32),          # running mean
            jnp.abs(jax.random.normal(k[6], (C,), dtype=jnp.float32)) + 0.5,  # running var
        ),
        "bn2": (
            jnp.ones((Co,), jnp.float32),
            jnp.zeros((Co,), jnp.float32),
            0.05 * jax.random.normal(k[7], (Co,), dtype=jnp.float32),
            jnp.full((Co,), 1.2, jnp.float32),
        ),
    }

    out = block_forward(x, params)
    out = jax.block_until_ready(out)

    ref = _reference_forward(x, params)
    assert out.shape == (N, Co, H, W), out.shape
    assert jnp.allclose(out, ref, rtol=1e-4, atol=1e-4), (
        float(jnp.max(jnp.abs(out - ref))))

    print("KERNEL_OK")
</pallas_src>

<mosaic_0001>
module attributes {stable_mosaic.version = 11 : i64} {
  func.func @kernel(%arg0: i32, %arg1: memref<1x4x384xf32, #tpu.memory_space<vmem>>, %arg2: memref<4x9xf32, #tpu.memory_space<vmem>>, %arg3: memref<4x1xf32, #tpu.memory_space<vmem>>, %arg4: memref<8x4xf32, #tpu.memory_space<vmem>>, %arg5: memref<8x1xf32, #tpu.memory_space<vmem>>, %arg6: memref<1x8x256xf32, #tpu.memory_space<vmem>>) attributes {dimension_semantics = [#tpu.dimension_semantics<parallel>], iteration_bounds = array<i64: 2>, scalar_prefetch = 0 : i64, scratch_operands = 0 : i64, tpu.core_type = #tpu.core_type<tc>, window_params = [{transform_indices = @transform_0, window_bounds = array<i64: 1, 4, 384>}, {pipeline_mode = #tpu.pipeline_mode<synchronous>, transform_indices = @transform_1, window_bounds = array<i64: 4, 9>}, {pipeline_mode = #tpu.pipeline_mode<synchronous>, transform_indices = @transform_2, window_bounds = array<i64: 4, 1>}, {pipeline_mode = #tpu.pipeline_mode<synchronous>, transform_indices = @transform_3, window_bounds = array<i64: 8, 4>}, {pipeline_mode = #tpu.pipeline_mode<synchronous>, transform_indices = @transform_4, window_bounds = array<i64: 8, 1>}, {transform_indices = @transform_5, window_bounds = array<i64: 1, 8, 256>}]} {
    %0 = tpu.iota {dimensions = array<i32: 1>} : vector<1x256xi32>
    %c16_i32 = arith.constant 16 : i32
    %c0_i32 = arith.constant 0 : i32
    %1 = arith.cmpi eq, %c16_i32, %c0_i32 : i32
    %c1_i32 = arith.constant 1 : i32
    %2 = arith.select %1, %c1_i32, %c16_i32 : i32
    %3 = vector.broadcast %2 : i32 to vector<1x256xi32>
    %4 = arith.remsi %0, %3 : vector<1x256xi32>
    %c0_i32_0 = arith.constant 0 : i32
    %5 = vector.broadcast %c0_i32_0 : i32 to vector<1x256xi32>
    %6 = arith.cmpi ne, %4, %5 : vector<1x256xi32>
    %c0_i32_1 = arith.constant 0 : i32
    %7 = vector.broadcast %c0_i32_1 : i32 to vector<1x256xi32>
    %8 = arith.cmpi slt, %4, %7 : vector<1x256xi32>
    %c0_i32_2 = arith.constant 0 : i32
    %9 = arith.cmpi slt, %2, %c0_i32_2 : i32
    %10 = vector.broadcast %9 : i1 to vector<1x256xi1>
    %11 = vector.broadcast %10 : vector<1x256xi1> to vector<1x256xi1>
    %12 = arith.xori %8, %11 : vector<1x256xi1>
    %13 = arith.andi %12, %6 : vector<1x256xi1>
    %14 = vector.broadcast %2 : i32 to vector<1x256xi32>
    %15 = arith.addi %4, %14 : vector<1x256xi32>
    %16 = arith.select %13, %15, %4 : vector<1x256xi1>, vector<1x256xi32>
    %c0_i32_3 = arith.constant 0 : i32
    %17 = vector.broadcast %c0_i32_3 : i32 to vector<1x256xi32>
    %18 = arith.cmpi ne, %16, %17 : vector<1x256xi32>
    %c15_i32 = arith.constant 15 : i32
    %19 = vector.broadcast %c15_i32 : i32 to vector<1x256xi32>
    %20 = arith.cmpi ne, %16, %19 : vector<1x256xi32>
    %c0 = arith.constant 0 : index
    %c0_4 = arith.constant 0 : index
    %c0_5 = arith.constant 0 : index
    %21 = vector.load %arg1[%c0, %c0_4, %c0_5] : memref<1x4x384xf32, #tpu.memory_space<vmem>>, vector<1x4x256xf32>
    %22 = vector.shape_cast %21 : vector<1x4x256xf32> to vector<4x256xf32>
    %cst = arith.constant 0.000000e+00 : f32
    %23 = vector.shape_cast %18 : vector<1x256xi1> to vector<1x256xi1>
    %24 = vector.broadcast %23 : vector<1x256xi1> to vector<4x256xi1>
    %25 = vector.broadcast %cst : f32 to vector<4x256xf32>
    %26 = arith.select %24, %22, %25 : vector<4x256xi1>, vector<4x256xf32>
    %c0_6 = arith.constant 0 : index
    %c0_7 = arith.constant 0 : index
    %27 = vector.load %arg2[%c0_6, %c0_7] : memref<4x9xf32, #tpu.memory_space<vmem>>, vector<4x1xf32>
    %28 = vector.broadcast %27 : vector<4x1xf32> to vector<4x256xf32>
    %29 = arith.mulf %26, %28 : vector<4x256xf32>
    %c0_8 = arith.constant 0 : index
    %c0_9 = arith.constant 0 : index
    %c1 = arith.constant 1 : index
    %30 = vector.load %arg1[%c0_8, %c0_9, %c1] : memref<1x4x384xf32, #tpu.memory_space<vmem>>, vector<1x4x256xf32>
    %31 = vector.shape_cast %30 : vector<1x4x256xf32> to vector<4x256xf32>
    %c0_10 = arith.constant 0 : index
    %c1_11 = arith.constant 1 : index
    %32 = vector.load %arg2[%c0_10, %c1_11] : memref<4x9xf32, #tpu.memory_space<vmem>>, vector<4x1xf32>
    %33 = vector.broadcast %32 : vector<4x1xf32> to vector<4x256xf32>
    %34 = arith.mulf %31, %33 : vector<4x256xf32>
    %35 = arith.addf %29, %34 : vector<4x256xf32>
    %c0_12 = arith.constant 0 : index
    %c0_13 = arith.constant 0 : index
    %c2 = arith.constant 2 : index
    %36 = vector.load %arg1[%c0_12, %c0_13, %c2] : memref<1x4x384xf32, #tpu.memory_space<vmem>>, vector<1x4x256xf32>
    %37 = vector.shape_cast %36 : vector<1x4x256xf32> to vector<4x256xf32>
    %cst_14 = arith.constant 0.000000e+00 : f32
    %38 = vector.shape_cast %20 : vector<1x256xi1> to vector<1x256xi1>
    %39 = vector.broadcast %38 : vector<1x256xi1> to vector<4x256xi1>
    %40 = vector.broadcast %cst_14 : f32 to vector<4x256xf32>
    %41 = arith.select %39, %37, %40 : vector<4x256xi1>, vector<4x256xf32>
    %c0_15 = arith.constant 0 : index
    %c2_16 = arith.constant 2 : index
    %42 = vector.load %arg2[%c0_15, %c2_16] : memref<4x9xf32, #tpu.memory_space<vmem>>, vector<4x1xf32>
    %43 = vector.broadcast %42 : vector<4x1xf32> to vector<4x256xf32>
    %44 = arith.mulf %41, %43 : vector<4x256xf32>
    %45 = arith.addf %35, %44 : vector<4x256xf32>
    %c0_17 = arith.constant 0 : index
    %c0_18 = arith.constant 0 : index
    %c16 = arith.constant 16 : index
    %46 = vector.load %arg1[%c0_17, %c0_18, %c16] : memref<1x4x384xf32, #tpu.memory_space<vmem>>, vector<1x4x256xf32>
    %47 = vector.shape_cast %46 : vector<1x4x256xf32> to vector<4x256xf32>
    %cst_19 = arith.constant 0.000000e+00 : f32
    %48 = vector.shape_cast %18 : vector<1x256xi1> to vector<1x256xi1>
    %49 = vector.broadcast %48 : vector<1x256xi1> to vector<4x256xi1>
    %50 = vector.broadcast %cst_19 : f32 to vector<4x256xf32>
    %51 = arith.select %49, %47, %50 : vector<4x256xi1>, vector<4x256xf32>
    %c0_20 = arith.constant 0 : index
    %c3 = arith.constant 3 : index
    %52 = vector.load %arg2[%c0_20, %c3] : memref<4x9xf32, #tpu.memory_space<vmem>>, vector<4x1xf32>
    %53 = vector.broadcast %52 : vector<4x1xf32> to vector<4x256xf32>
    %54 = arith.mulf %51, %53 : vector<4x256xf32>
    %55 = arith.addf %45, %54 : vector<4x256xf32>
    %c0_21 = arith.constant 0 : index
    %c0_22 = arith.constant 0 : index
    %c17 = arith.constant 17 : index
    %56 = vector.load %arg1[%c0_21, %c0_22, %c17] : memref<1x4x384xf32, #tpu.memory_space<vmem>>, vector<1x4x256xf32>
    %57 = vector.shape_cast %56 : vector<1x4x256xf32> to vector<4x256xf32>
    %c0_23 = arith.constant 0 : index
    %c4 = arith.constant 4 : index
    %58 = vector.load %arg2[%c0_23, %c4] : memref<4x9xf32, #tpu.memory_space<vmem>>, vector<4x1xf32>
    %59 = vector.broadcast %58 : vector<4x1xf32> to vector<4x256xf32>
    %60 = arith.mulf %57, %59 : vector<4x256xf32>
    %61 = arith.addf %55, %60 : vector<4x256xf32>
    %c0_24 = arith.constant 0 : index
    %c0_25 = arith.constant 0 : index
    %c18 = arith.constant 18 : index
    %62 = vector.load %arg1[%c0_24, %c0_25, %c18] : memref<1x4x384xf32, #tpu.memory_space<vmem>>, vector<1x4x256xf32>
    %63 = vector.shape_cast %62 : vector<1x4x256xf32> to vector<4x256xf32>
    %cst_26 = arith.constant 0.000000e+00 : f32
    %64 = vector.shape_cast %20 : vector<1x256xi1> to vector<1x256xi1>
    %65 = vector.broadcast %64 : vector<1x256xi1> to vector<4x256xi1>
    %66 = vector.broadcast %cst_26 : f32 to vector<4x256xf32>
    %67 = arith.select %65, %63, %66 : vector<4x256xi1>, vector<4x256xf32>
    %c0_27 = arith.constant 0 : index
    %c5 = arith.constant 5 : index
    %68 = vector.load %arg2[%c0_27, %c5] : memref<4x9xf32, #tpu.memory_space<vmem>>, vector<4x1xf32>
    %69 = vector.broadcast %68 : vector<4x1xf32> to vector<4x256xf32>
    %70 = arith.mulf %67, %69 : vector<4x256xf32>
    %71 = arith.addf %61, %70 : vector<4x256xf32>
    %c0_28 = arith.constant 0 : index
    %c0_29 = arith.constant 0 : index
    %c32 = arith.constant 32 : index
    %72 = vector.load %arg1[%c0_28, %c0_29, %c32] : memref<1x4x384xf32, #tpu.memory_space<vmem>>, vector<1x4x256xf32>
    %73 = vector.shape_cast %72 : vector<1x4x256xf32> to vector<4x256xf32>
    %cst_30 = arith.constant 0.000000e+00 : f32
    %74 = vector.shape_cast %18 : vector<1x256xi1> to vector<1x256xi1>
    %75 = vector.broadcast %74 : vector<1x256xi1> to vector<4x256xi1>
    %76 = vector.broadcast %cst_30 : f32 to vector<4x256xf32>
    %77 = arith.select %75, %73, %76 : vector<4x256xi1>, vector<4x256xf32>
    %c0_31 = arith.constant 0 : index
    %c6 = arith.constant 6 : index
    %78 = vector.load %arg2[%c0_31, %c6] : memref<4x9xf32, #tpu.memory_space<vmem>>, vector<4x1xf32>
    %79 = vector.broadcast %78 : vector<4x1xf32> to vector<4x256xf32>
    %80 = arith.mulf %77, %79 : vector<4x256xf32>
    %81 = arith.addf %71, %80 : vector<4x256xf32>
    %c0_32 = arith.constant 0 : index
    %c0_33 = arith.constant 0 : index
    %c33 = arith.constant 33 : index
    %82 = vector.load %arg1[%c0_32, %c0_33, %c33] : memref<1x4x384xf32, #tpu.memory_space<vmem>>, vector<1x4x256xf32>
    %83 = vector.shape_cast %82 : vector<1x4x256xf32> to vector<4x256xf32>
    %c0_34 = arith.constant 0 : index
    %c7 = arith.constant 7 : index
    %84 = vector.load %arg2[%c0_34, %c7] : memref<4x9xf32, #tpu.memory_space<vmem>>, vector<4x1xf32>
    %85 = vector.broadcast %84 : vector<4x1xf32> to vector<4x256xf32>
    %86 = arith.mulf %83, %85 : vector<4x256xf32>
    %87 = arith.addf %81, %86 : vector<4x256xf32>
    %c0_35 = arith.constant 0 : index
    %c0_36 = arith.constant 0 : index
    %c34 = arith.constant 34 : index
    %88 = vector.load %arg1[%c0_35, %c0_36, %c34] : memref<1x4x384xf32, #tpu.memory_space<vmem>>, vector<1x4x256xf32>
    %89 = vector.shape_cast %88 : vector<1x4x256xf32> to vector<4x256xf32>
    %cst_37 = arith.constant 0.000000e+00 : f32
    %90 = vector.shape_cast %20 : vector<1x256xi1> to vector<1x256xi1>
    %91 = vector.broadcast %90 : vector<1x256xi1> to vector<4x256xi1>
    %92 = vector.broadcast %cst_37 : f32 to vector<4x256xf32>
    %93 = arith.select %91, %89, %92 : vector<4x256xi1>, vector<4x256xf32>
    %c0_38 = arith.constant 0 : index
    %c8 = arith.constant 8 : index
    %94 = vector.load %arg2[%c0_38, %c8] : memref<4x9xf32, #tpu.memory_space<vmem>>, vector<4x1xf32>
    %95 = vector.broadcast %94 : vector<4x1xf32> to vector<4x256xf32>
    %96 = arith.mulf %93, %95 : vector<4x256xf32>
    %97 = arith.addf %87, %96 : vector<4x256xf32>
    %c0_39 = arith.constant 0 : index
    %c0_40 = arith.constant 0 : index
    %98 = vector.load %arg3[%c0_39, %c0_40] : memref<4x1xf32, #tpu.memory_space<vmem>>, vector<4x1xf32>
    %99 = vector.broadcast %98 : vector<4x1xf32> to vector<4x256xf32>
    %100 = arith.addf %97, %99 : vector<4x256xf32>
    %cst_41 = arith.constant 0.000000e+00 : f32
    %101 = vector.broadcast %cst_41 : f32 to vector<4x256xf32>
    %102 = arith.maximumf %100, %101 : vector<4x256xf32>
    %c0_42 = arith.constant 0 : index
    %c0_43 = arith.constant 0 : index
    %103 = vector.load %arg4[%c0_42, %c0_43] : memref<8x4xf32, #tpu.memory_space<vmem>>, vector<8x4xf32>
    %cst_44 = arith.constant dense<0.000000e+00> : vector<8x256xf32>
    %104 = tpu.matmul %103, %102, %cst_44 {dimension_numbers = #tpu.dot_dimension_numbers<[1], [0], [0], [1], [0, 0, 1, 1], [], []>} : vector<8x4xf32>, vector<4x256xf32>, vector<8x256xf32> -> vector<8x256xf32>
    %c0_45 = arith.constant 0 : index
    %c0_46 = arith.constant 0 : index
    %105 = vector.load %arg5[%c0_45, %c0_46] : memref<8x1xf32, #tpu.memory_space<vmem>>, vector<8x1xf32>
    %106 = vector.broadcast %105 : vector<8x1xf32> to vector<8x256xf32>
    %107 = arith.addf %104, %106 : vector<8x256xf32>
    %cst_47 = arith.constant 0.000000e+00 : f32
    %108 = vector.broadcast %cst_47 : f32 to vector<8x256xf32>
    %109 = arith.maximumf %107, %108 : vector<8x256xf32>
    %c0_48 = arith.constant 0 : index
    %c0_49 = arith.constant 0 : index
    %c0_50 = arith.constant 0 : index
    %110 = vector.load %arg6[%c0_48, %c0_49, %c0_50] : memref<1x8x256xf32, #tpu.memory_space<vmem>>, vector<1x8x256xf32>
    %111 = vector.shape_cast %110 : vector<1x8x256xf32> to vector<8x256xf32>
    %112 = vector.shape_cast %109 : vector<8x256xf32> to vector<1x8x256xf32>
    tpu.vector_store %arg6[%c0_48, %c0_49, %c0_50], %112 {strides = array<i32>} : memref<1x8x256xf32, #tpu.memory_space<vmem>>, vector<1x8x256xf32>,
    return
  }
  func.func @transform_0(%arg0: i32) -> (i32, i32, i32) {
    %c0_i32 = arith.constant 0 : i32
    %c0_i32_0 = arith.constant 0 : i32
    %c0_i32_1 = arith.constant 0 : i32
    return %arg0, %c0_i32, %c0_i32_0 : i32, i32, i32
  }
  func.func @transform_1(%arg0: i32) -> (i32, i32) {
    %c0_i32 = arith.constant 0 : i32
    %c0_i32_0 = arith.constant 0 : i32
    %c0_i32_1 = arith.constant 0 : i32
    return %c0_i32, %c0_i32_0 : i32, i32
  }
  func.func @transform_2(%arg0: i32) -> (i32, i32) {
    %c0_i32 = arith.constant 0 : i32
    %c0_i32_0 = arith.constant 0 : i32
    %c0_i32_1 = arith.constant 0 : i32
    return %c0_i32, %c0_i32_0 : i32, i32
  }
  func.func @transform_3(%arg0: i32) -> (i32, i32) {
    %c0_i32 = arith.constant 0 : i32
    %c0_i32_0 = arith.constant 0 : i32
    %c0_i32_1 = arith.constant 0 : i32
    return %c0_i32, %c0_i32_0 : i32, i32
  }
  func.func @transform_4(%arg0: i32) -> (i32, i32) {
    %c0_i32 = arith.constant 0 : i32
    %c0_i32_0 = arith.constant 0 : i32
    %c0_i32_1 = arith.constant 0 : i32
    return %c0_i32, %c0_i32_0 : i32, i32
  }
  func.func @transform_5(%arg0: i32) -> (i32, i32, i32) {
    %c0_i32 = arith.constant 0 : i32
    %c0_i32_0 = arith.constant 0 : i32
    %c0_i32_1 = arith.constant 0 : i32
    return %arg0, %c0_i32, %c0_i32_0 : i32, i32, i32
  }
}

</mosaic_0001>

<bundles_post_ra>
// kernel: tpu_custom_call.1
= control target key start
LH: loop header
LB: loop body
LE: loop exit
PB: predicated region body
PF: predicated region fallthrough
CT: control target
= control target key end

     0   :  { %10 = vsyncpa [#allocation3], 0  ;;  %s1214_s0 = inlined_call_operand.vmem [shape: f32[2,4,384], index: 0, kind: input, shape index: {}]   ;;  %s1215_s1 = inlined_call_operand.hbm [shape: f32[4,9], index: 1, kind: input, shape index: {}]   ;;  %s1216_s2 = inlined_call_operand.vmem [shape: f32[4,1], index: 2, kind: input, shape index: {}]   ;;  %s1217_s3 = inlined_call_operand.vmem [shape: f32[8,4], index: 3, kind: input, shape index: {}]   ;;  %s1218_s4 = inlined_call_operand.vmem [shape: f32[8,1], index: 4, kind: input, shape index: {}]   ;;  %s1219_s5 = inlined_call_operand.hbm [shape: f32[2,8,256], index: 5, kind: output, shape index: {}]  }
   0x1   :  { %11 = vsyncpa [#allocation4], 0 }
   0x2   :  { %13 = vsyncpa [#allocation4 + $0x1], 0  ;;  %s956_s18 = smov 0   ;;  %s958_s19 = smov 0  }
   0x3   :  { %s960_s20 = smov 0   ;;  %s962_s21 = smov 0  }
   0x4 LB: > { %s977_s22 = sadd.s32 4294967295, %s903_s21   ;;  %s711_s23 = sadd.s32 4294967294, %s903_s21   ;;  %s903_s21 = sphi %s962_s21, %s1243_s21   ;;  %s899_s20 = sphi %s960_s20, %s1242_s20   ;;  %s895_s19 = sphi %s958_s19, %s1241_s19   ;;  %s891_s18 = sphi %s956_s18, %s1240_s18  }
   0x5   : > { %s981_s24 = sadd.s32 1, %s903_s21   ;;  %s136_s25 = sadd.s32 1, %s899_s20 }
   0x6   : > { %s133_s26 = ssub.s32 %s903_s21, %s981_s24  ;;  %p146_p0 = scmp.ne.s32.totalorder %s899_s20, %s895_s19 }
   0x7   : > { %p134_p1 = scmp.eq.s32.totalorder %s133_s26, 0  ;;  %p147_p2 = scmp.eq.s32.totalorder %s977_s22, 1 }
   0x8   : > { %p152_p3 = scmp.ne.s32.totalorder %s895_s19, %s891_s18  ;;  %p153_p4 = scmp.eq.s32.totalorder %s711_s23, 1 }
   0x9   : > { %s992_s27 = scalar_select %p134_p1, %s899_s20, %s136_s25  }
   0xa   : > { %p994_p5 = por %p147_p2, %p146_p0  ;;  %p998_p6 = por %p153_p4, %p152_p3 }
   0xb   : > { %p712_p7 = scmp.ge.s32.totalorder %s903_s21, 1  ;;  %p160_p8 = scmp.lt.s32.totalorder %s903_s21, 3 }
   0xc   : > { %s1223_s28 = scalar_select %p994_p5, 1, 0 }
   0xd   : > { %s1224_s29 = scalar_select %p998_p6, 1, 0 }
   0xe   : > { %p1220_p9 = scmp.eq.s32.totalorder %s977_s22, 0  ;;  %p1005_p10 = pnand %p712_p7, %p160_p8 }
   0xf   : > { %s905_s6 = smov [#allocation2]   ;;  %s809_s11 = scalar_lea.hbm %s1215_s1, 64 }
  0x10   : > { %s1225_s30 = scalar_select %p1005_p10, 1, 0 }
  0x11   : > { %s173_s7 = sshll.u32 %s905_s6, 4  ;;  %p735_p11 = pneg %p1005_p10  ;;  %s174_s7 = int_to_ptr.vmem [resolvable:$true] %s173_s7 }
  0x12   : > { %p810_p13 = scmp.ne.s32.totalorder %s1215_s1, %s809_s11  ;;  %p816_p3 = scmp.lt.u32.totalorder %s809_s11, %s1215_s1 }
  0x13   : > { %p1013_p12 = pnand %p1220_p9, %p735_p11 }
  0x15   : > { %p811_p0 = pneg %p1013_p12 }
  0x17   : > { %p812_p1 = pnand %p811_p0, %p810_p13 }
  0x19   : > { %p813_p2 = pneg %p812_p1 }
  0x1b   : > { %p818_p4 = pnand %p816_p3, %p813_p2 }
  0x1d   : > { %821 = shalt.err (!%p818_p4)
}
  0x1e   : > { %s822_s16 = scalar_lea.vmem %s174_s7, 64  ;;  %p830_p9 = scmp.lt.s32.totalorder %s174_s7, %s174_s7 }
  0x1f   : > { %p823_p7 = scmp.ne.s32.totalorder %s174_s7, %s822_s16  ;;  %p831_p6 = scmp.lt.s32.totalorder %s822_s16, %s822_s16 }
  0x21   : > { %p825_p8 = pnand %p823_p7, %p811_p0  ;;  %p832_p5 = por %p831_p6, %p830_p9 }
  0x23   : > { %p826_p11 = pneg %p825_p8 }
  0x25   : > { %p833_p10 = pnand %p832_p5, %p826_p11 }
  0x27   : > { %836 = shalt.err (!%p833_p10)
}
  0x28   : > { %738 = dma.hbm_to_vmem [thread:$0]  (!%p1013_p12), %s1215_s1, 64, %s174_s7, [#allocation3]  }
  0x29   : > { %p1227_p13 = scmp.ne.s32.totalorder %s1225_s30, 0 }
  0x2a   : > { %p1228_p1 = scmp.eq.s32.totalorder (!%p1227_p13), %s977_s22, 0 }
  0x2b   : > { %203 = sbr.rel (%p1227_p13) target bundleno = 563 (0x233), region = 40 }
  0x32   : > { %882 = dma.done.wait (%p1228_p1), [#allocation3], 64   ;;  %p1229_p0 = pmov %p1228_p1 }
  0x33   : > { %v906_v0 = vmov 1   ;;  %v907_v1 = vmov 7   ;;  %p231_p5 = scmp.lt.s32.totalorder %s977_s22, 1  ;;  %v277_v2 = vld [vmem:[#allocation2] sm:$0xf]  ;;  %v908_v5 = vmov 4   ;;  %v236_v19 = vlaneseq }
  0x34   : > { %884 = vsyncadd (%p1229_p0), [#allocation3], 4294967232  ;;  %798 = vset.pattern.permute.xlu0 %v906_v0  ;;  %800 = vset.pattern.permute.xlu1 %v907_v1  ;;  %v453_v3 = vld [vmem:[#allocation2] sm:$0xf]  ;;  %v909_v6 = vmov 0   ;;  %v910_v9 = vmov 2  }
  0x35   : > { %s232_s25 = scalar_select %p231_p5, %s977_s22, 1  ;;  %288 = vperm.xlu0 %798, %v277_v2   ;;  %466 = vperm.xlu1 %800, %v453_v3   ;;  %v366_v4 = vld [vmem:[#allocation2] sm:$0xf]  ;;  %v911_v10 = vmov 3   ;;  %v913_v13 = vmov 5   ;;  %v914_v15 = vmov 6  }
  0x36   : > { %v338_v7 = vld [vmem:[#allocation2] sm:$0xf]  ;;  %s912_s8 = smov 126   ;;  %s915_s9 = smov 112   ;;  %v917_v17 = vmov 8   ;;  %v1060_v20 = vand.u32 127, %v236_v19 }
  0x37   : > { %s728_s26 = smul.u32 12, %s232_s25  ;;  %v425_v16 = vld [vmem:[#allocation2] sm:$0xf]  ;;  %s916_s10 = smov 110   ;;  %v920_v28 = vmov 839922192  }
  0x38   : > { %s918_s11 = smov 96   ;;  %v522_v21 = vld [vmem:[%s1216_s2] sm:$0xf]  ;;  %v1067_v22 = vadd.s32 128, %v1060_v20  ;;  %s919_s14 = smov 94   ;;  %v291_v29 = vunpack.c.l.s4 %v920_v28  ;;  %v294_v31 = vshrl.u32 %v236_v19, 7 }
  0x39   : > { %799 = vset.pattern.permute.xlu0 %v908_v5  ;;  %801 = vset.pattern.permute.xlu1 %v909_v6  ;;  %s1044_s7 = scalar_lea.vmem %s1214_s0, %s728_s26  ;;  %v512_v27 = vld [vmem:[#allocation2] sm:$0xf]  ;;  %s921_s15 = smov 127   ;;  %v924_v52 = vmov 0.0   ;;  %vm331_vm1 = vcmask 1031168   ;;  %vm359_vm3 = vcmask 916480  }
  0x3a   : > { %379 = vperm.xlu0 %799, %v366_v4   ;;  %280 = vperm.xlu1 %801, %v277_v2   ;;  %v1047_v8 = vld [vmem:[%s1044_s7] sm:$0xff]  ;;  %v317_v12 = vld [vmem:[%s1044_s7 + $0x8] sm:$0xf]  ;;  %v250_v23 = vand.u32 15, %v1067_v22  ;;  %v292_v30 = vunpack.c.0.s8 %v291_v29  ;;  %s922_s16 = smov 111   ;;  %s923_s17 = smov 95  }
  0x3b   : > { %v1051_v11 = vcombine.high %v1047_v8, %v1047_v8  ;;  %v349_v14 = vld [vmem:[%s1044_s7 + $0x8] sm:$0xf]  ;;  %614 = vmatprep.mubr.f32.mxu0 %v924_v52  ;;  %v533_v53 = vld [vmem:[%s1218_s4] sm:$0xff]  ;;  %vm418_vm6 = vcmask 900096   ;;  %vm309_vm7 = vcmask 1039360   ;;  %vm446_vm8 = vcmask 785408  }
  0x3c   : > { %v436_v18 = vld [vmem:[%s1044_s7 + $0x8] sm:$0xf]  ;;  %vm1074_vm0 = vcmp.ne.s32.totalorder %v250_v23, 0  ;;  %v295_v32 = vsub.s32 %v292_v30, %v294_v31  ;;  %vm1122_vm5 = vcmp.ne.s32.totalorder %v250_v23, 15  ;;  %vm400_vm9 = vcmask 908288   ;;  %s228_s6 = sand.u32 1, %s895_s19  }
  0x3d   : > { %v408_v24 = vld [vmem:[%s1044_s7 + $0x8] sm:$0xf]  ;;  %v276_v26 = vsel %vm1074_vm0, %v1051_v11, 0.0  ;;  %vm505_vm10 = vcmask 769024   ;;  %vm487_vm11 = vcmask 777216   ;;  %vm543_vm12 = vcmask 1043456  }
  0x3e   : > { %802 = vset.pattern.permute.xlu1 %v910_v9  ;;  %803 = vset.pattern.permute.xlu0 %v911_v10  ;;  %v286_v33 = vld [vmem:[%s1044_s7 + $0x8] sm:$0xf]  ;;  %vm539_vm13 = vcmask 31744   ;;  %p1238_p9 = scmp.ne.s32.totalorder %s1223_s28, 0 }
  0x3f   : > { %341 = vperm.xlu1 %802, %v338_v7   ;;  %369 = vperm.xlu0 %803, %v366_v4   ;;  %v495_v40 = vld [vmem:[%s1044_s7 + $0x8] sm:$0xf] }
  0x40   : > { %v377_v42 = vld [vmem:[%s1044_s7 + $0x8] sm:$0xf] }
  0x41   : > { %v464_v45 = vld [vmem:[%s1044_s7 + $0x8] sm:$0xf]  ;;  %s717_s7 = sshll.u32 %s228_s6, 4 }
  0x43   : > { %327 = vrot.lane.b32.xlu1 %v1051_v11, %s912_s8  ;;  %325 = vrot.lane.b32.xlu0 %v1047_v8, %s912_s8 }
  0x44   : > { %804 = vset.pattern.permute.xlu1 %v913_v13  ;;  %805 = vset.pattern.permute.xlu0 %v914_v15 }
  0x47   : > { %329 = vrot.lane.b32.xlu1 %v317_v12, %s912_s8  ;;  %357 = vrot.lane.b32.xlu0 %v349_v14, %s915_s9  ;;  %v243_v12 = vand.u32 15, %v1060_v20  ;;  %s727_s8 = sshll.u32 %s977_s22, 8  ;;  %s925_s22 = smov [#allocation5]  }
  0x48   : > { %s1172_s13 = scalar_lea.hbm %s1219_s5, %s727_s8 }
  0x49   : > { %vm1109_vm2 = vcmp.ne.s32.totalorder %v243_v12, 0  ;;  %vm1113_vm4 = vcmp.ne.s32.totalorder %v243_v12, 15 }
  0x4a   : > { %v275_v19 = vsel %vm1109_vm2, %v1047_v8, 0.0 }
  0x4b   : > { %428 = vperm.xlu1 %804, %v425_v16   ;;  %456 = vperm.xlu0 %805, %v453_v3  }
  0x4f   : > { %355 = vrot.lane.b32.xlu1 %v1051_v11, %s915_s9  ;;  %412 = vrot.lane.b32.xlu0 %v1047_v8, %s916_s10 }
  0x50   : > { %806 = vset.pattern.permute.xlu1 %v917_v17  ;;  %807 = vset.pattern.permute.xlu0 %v909_v6 }
  0x53   : > { %353 = vrot.lane.b32.xlu1 %v1047_v8, %s915_s9  ;;  %444 = vrot.lane.b32.xlu0 %v436_v18, %s918_s11  ;;  %s230_s9 = scalar_lea.vmem [#allocation5], %s717_s7 }
  0x57   : > { %414 = vrot.lane.b32.xlu1 %v1051_v11, %s916_s10  ;;  %525 = vperm.xlu0 %807, %v522_v21  }
  0x5b   : > { %416 = vrot.lane.b32.xlu1 %v408_v24, %s916_s10  ;;  %s640_s10 = sshll.u32 %s230_s9, 4  ;;  %s1174_s10 = int_to_ptr.vmem [resolvable:$true] %s640_s10 }
  0x5f   : > { %515 = vperm.xlu1 %806, %v512_v27  }
  0x63   : > { %442 = vrot.lane.b32.xlu1 %v1051_v11, %s918_s11 }
  0x67   : > { %440 = vrot.lane.b32.xlu1 %v1047_v8, %s918_s11 }
  0x6b   : > { %501 = vrot.lane.b32.xlu1 %v1051_v11, %s919_s14 }
  0xb4   : > { %v289_v34 = vpop.permute.xlu0 %288  ;;  %v467_v41 = vpop.permute.xlu1 %466 }
  0xb5   : > { %v296_v35 = vrot.slane %v289_v34, %v295_v32  ;;  %v474_v44 = vrot.slane %v467_v41, %v295_v32 }
  0xb7   : > { %v298_v36 = vmul.f32 %v1047_v8, %v296_v35  ;;  %v299_v37 = vmul.f32 %v296_v35, %v286_v33  ;;  %v477_v48 = vmul.f32 %v474_v44, %v464_v45  ;;  %v476_v49 = vmul.f32 %v474_v44, %v1047_v8 }
  0xb9   : > { %307 = vrot.lane.b32.xlu1 %v299_v37, %s921_s15  ;;  %303 = vrot.lane.b32.xlu0 %v298_v36, %s921_s15  ;;  %v380_v38 = vpop.permute.xlu0 %379  ;;  %v302_v47 = vcombine.high %v298_v36, %v298_v36  ;;  %v480_v51 = vcombine.high %v476_v49, %v476_v49  ;;  %v281_v54 = vpop.permute.xlu1 %280 }
  0xba   : > { %v387_v39 = vrot.slane %v380_v38, %v295_v32  ;;  %v283_v30 = vmul.f32 %v281_v54, %v275_v19  ;;  %v284_v22 = vmul.f32 %v281_v54, %v276_v26 }
  0xbc   : > { %v389_v43 = vmul.f32 %v387_v39, %v1047_v8  ;;  %v390_v46 = vmul.f32 %v387_v39, %v377_v42 }
  0xbd   : > { %503 = vrot.lane.b32.xlu1 %v495_v40, %s919_s14 }
  0xbe   : > { %394 = vrot.lane.b32.xlu0 %v389_v43, %s922_s16  ;;  %v393_v50 = vcombine.high %v389_v43, %v389_v43  ;;  %v342_v55 = vpop.permute.xlu1 %341  ;;  %v370_v61 = vpop.permute.xlu0 %369 }
  0xc1   : > { %398 = vrot.lane.b32.xlu1 %v390_v46, %s922_s16 }
  0xc2   : > { %305 = vrot.lane.b32.xlu0 %v302_v47, %s921_s15  ;;  %v328_v56 = vpop.permute.xlu1 %327  ;;  %v326_v63 = vpop.permute.xlu0 %325  ;;  %s837_s15 = scalar_lea.vmem %s1174_s10, 256 }
  0xc3   : > { %v332_v17 = vsel %vm331_vm1, %v326_v63, %v328_v56  ;;  %p838_p6 = scmp.ne.s32.totalorder %s1174_s10, %s837_s15 }
  0xc4   : > { %v336_v29 = vsel %vm1113_vm4, %v332_v17, 0.0 }
  0xc5   : > { %485 = vrot.lane.b32.xlu1 %v477_v48, %s923_s17  ;;  %v344_v35 = vmul.f32 %v342_v55, %v336_v29  ;;  %v532_v29 = vld [vmem:[%s1217_s3] sm:$0xff]  ;;  %p839_p10 = pnand %p838_p6, %p1238_p9 }
  0xc6   : > { %396 = vrot.lane.b32.xlu0 %v393_v50, %s922_s16  ;;  %v330_v57 = vpop.permute.xlu1 %329  ;;  %v358_v0 = vpop.permute.xlu0 %357  ;;  %s841_s16 = sshll.u32 %s925_s22, 4  ;;  %s842_s16 = int_to_ptr.vmem [resolvable:$false] %s841_s16 }
  0xc7   : > { %v333_v21 = vsel %vm331_vm1, %v328_v56, %v330_v57  ;;  %p840_p12 = pneg %p839_p10  ;;  %p844_p2 = scmp.lt.s32.totalorder %s1174_s10, %s842_s16 }
  0xc8   : > { %v337_v31 = vsel %vm1122_vm5, %v333_v21, 0.0 }
  0xc9   : > { %481 = vrot.lane.b32.xlu1 %v476_v49, %s923_s17  ;;  %v345_v38 = vmul.f32 %v342_v55, %v337_v31 }
  0xca   : > { %483 = vrot.lane.b32.xlu0 %v480_v51, %s923_s17  ;;  %v1098_v58 = vpop.permute.xlu1 %428  ;;  %v1102_v3 = vpop.permute.xlu0 %456  ;;  %s843_s17 = scalar_lea.vmem %s842_s16, 512 }
  0xcb   : > { %p845_p3 = scmp.lt.s32.totalorder %s843_s17, %s837_s15 }
  0xcd   : > { %p846_p4 = por %p845_p3, %p844_p2 }
  0xce   : > { %499 = vrot.lane.b32.xlu0 %v1047_v8, %s919_s14  ;;  %v356_v59 = vpop.permute.xlu1 %355  ;;  %v413_v5 = vpop.permute.xlu0 %412  ;;  %s626_s14 = scalar_lea.sflag [#allocation4], %s228_s6 }
  0xcf   : > { %v361_v28 = vsel %vm359_vm3, %v356_v59, %v358_v0  ;;  %p847_p7 = pnand %p846_p4, %p840_p12 }
  0xd0   : > { %v365_v32 = vsel %vm1074_vm0, %v361_v28, 0.0 }
  0xd1   : > { %v373_v26 = vmul.f32 %v370_v61, %v365_v32 }
  0xd2   : > { %536 = vperm.xlu0 %807, %v533_v53   ;;  %v354_v60 = vpop.permute.xlu1 %353  ;;  %v445_v6 = vpop.permute.xlu0 %444 }
  0xd3   : > { %v360_v27 = vsel %vm359_vm3, %v354_v60, %v356_v59 }
  0xd4   : > { %v364_v23 = vsel %vm1109_vm2, %v360_v27, 0.0 }
  0xd5   : > { %v372_v11 = vmul.f32 %v370_v61, %v364_v23 }
  0xd6   : > { %v415_v62 = vpop.permute.xlu1 %414  ;;  %v1106_v10 = vpop.permute.xlu0 %525 }
  0xd7   : > { %v419_v33 = vsel %vm418_vm6, %v413_v5, %v415_v62 }
  0xd8   : > { %v423_v42 = vsel %vm1113_vm4, %v419_v33, 0.0 }
  0xd9   : > { %v431_v50 = vmul.f32 %v1098_v58, %v423_v42 }
  0xda   : > { %v417_v1 = vpop.permute.xlu1 %416 }
  0xdb   : > { %v420_v39 = vsel %vm418_vm6, %v415_v62, %v417_v1 }
  0xdc   : > { %v424_v49 = vsel %vm1122_vm5, %v420_v39, 0.0 }
  0xdd   : > { %v432_v57 = vmul.f32 %v1098_v58, %v424_v49 }
  0xde   : > { %v1100_v2 = vpop.permute.xlu1 %515 }
  0xe2   : > { %v443_v4 = vpop.permute.xlu1 %442 }
  0xe3   : > { %v448_v43 = vsel %vm446_vm8, %v443_v4, %v445_v6 }
  0xe4   : > { %v452_v53 = vsel %vm1074_vm0, %v448_v43, 0.0 }
  0xe5   : > { %v460_v63 = vmul.f32 %v1102_v3, %v452_v53 }
  0xe6   : > { %v441_v7 = vpop.permute.xlu1 %440 }
  0xe7   : > { %v447_v44 = vsel %vm446_vm8, %v441_v7, %v443_v4 }
  0xe8   : > { %v451_v54 = vsel %vm1109_vm2, %v447_v44, 0.0 }
  0xe9   : > { %v459_v0 = vmul.f32 %v1102_v3, %v451_v54 }
  0xea   : > { %v1104_v9 = vpop.permute.xlu1 %501 }
 0x12b   : > { %v308_v13 = vpop.permute.xlu1 %307  ;;  %v304_v14 = vpop.permute.xlu0 %303 }
 0x12f   : > { %v504_v18 = vpop.permute.xlu1 %503 }
 0x130   : > { %v395_v24 = vpop.permute.xlu0 %394  ;;  %v507_v59 = vsel %vm505_vm10, %v1104_v9, %v504_v18 }
 0x131   : > { %v511_v5 = vsel %vm1122_vm5, %v507_v59, 0.0 }
 0x132   : > { %v519_v15 = vmul.f32 %v1100_v2, %v511_v5 }
 0x133   : > { %v399_v8 = vpop.permute.xlu1 %398 }
 0x134   : > { %v306_v34 = vpop.permute.xlu0 %305 }
 0x135   : > { %v310_v36 = vsel %vm309_vm7, %v304_v14, %v306_v34  ;;  %v311_v37 = vsel %vm309_vm7, %v306_v34, %v308_v13 }
 0x136   : > { %v314_v40 = vadd.f32 %v310_v36, %v283_v30  ;;  %v315_v41 = vadd.f32 %v311_v37, %v284_v22 }
 0x137   : > { %v486_v47 = vpop.permute.xlu1 %485 }
 0x138   : > { %v346_v45 = vadd.f32 %v344_v35, %v314_v40  ;;  %v347_v46 = vadd.f32 %v345_v38, %v315_v41  ;;  %v397_v48 = vpop.permute.xlu0 %396 }
 0x139   : > { %v401_v55 = vsel %vm400_vm9, %v395_v24, %v397_v48  ;;  %v402_v56 = vsel %vm400_vm9, %v397_v48, %v399_v8 }
 0x13a   : > { %v374_v51 = vadd.f32 %v372_v11, %v346_v45  ;;  %v375_v52 = vadd.f32 %v373_v26, %v347_v46 }
 0x13b   : > { %v482_v4 = vpop.permute.xlu1 %481 }
 0x13c   : > { %v405_v60 = vadd.f32 %v401_v55, %v374_v51  ;;  %v406_v61 = vadd.f32 %v402_v56, %v375_v52  ;;  %v484_v62 = vpop.permute.xlu0 %483 }
 0x13d   : > { %v488_v12 = vsel %vm487_vm11, %v482_v4, %v484_v62  ;;  %v489_v13 = vsel %vm487_vm11, %v484_v62, %v486_v47 }
 0x13e   : > { %v433_v25 = vadd.f32 %v431_v50, %v405_v60  ;;  %v434_v1 = vadd.f32 %v432_v57, %v406_v61 }
 0x140   : > { %v461_v6 = vadd.f32 %v459_v0, %v433_v25  ;;  %v462_v7 = vadd.f32 %v460_v63, %v434_v1  ;;  %v500_v58 = vpop.permute.xlu0 %499 }
 0x141   : > { %v506_v14 = vsel %vm505_vm10, %v500_v58, %v1104_v9 }
 0x142   : > { %v492_v17 = vadd.f32 %v488_v12, %v461_v6  ;;  %v493_v18 = vadd.f32 %v489_v13, %v462_v7  ;;  %v510_v3 = vsel %vm1113_vm4, %v506_v14, 0.0 }
 0x143   : > { %v518_v19 = vmul.f32 %v1100_v2, %v510_v3 }
 0x144   : > { %v521_v20 = vadd.f32 %v519_v15, %v493_v18 }
 0x145   : > { %v520_v21 = vadd.f32 %v518_v19, %v492_v17 }
 0x146   : > { %v529_v24 = vadd.f32 %v1106_v10, %v521_v20 }
 0x147   : > { %v528_v27 = vadd.f32 %v1106_v10, %v520_v21 }
 0x148   : > { %v531_v28 = vmax.f32 %v529_v24, 0.0 }
 0x149   : > { %v530_v9 = vmax.f32 %v528_v27, 0.0 }
 0x14a   : > { %719 = vmatprep.subr.msk.mxu0 %vm543_vm12, %v531_v28 }
 0x14b   : > { %720 = vmatpush1.msk.msra.mxu0 %vm543_vm12, %v530_v9 }
 0x14c   : > { %721 = vmatmul.mubr.msk.f32.vlgmr.msra.gmra.mrb[0].mxu0 %vm539_vm13, %v532_v29 }
 0x151   : > { %v537_v2 = vpop.permute.xlu0 %536 }
 0x21f   : > { %v616_v16 = vpop.f32.mrb[0].mxu0 }
 0x220   : > { %v617_v30 = vadd.f32 %v616_v16, %v537_v2  ;;  %v618_v31 = vpop.f32.mrb[1].mxu0 }
 0x221   : > { %v619_v10 = vadd.f32 %v618_v31, %v537_v2 }
 0x222   : > { %v621_v8 = vmax.f32 %v617_v30, 0.0 }
 0x223   : > { %v622_v22 = vmax.f32 %v619_v10, 0.0 }
 0x224   : > { %623 = vst [vmem:[%s230_s9] sm:$0xff] %v621_v8 }
 0x225   : > { %624 = vst [vmem:[%s230_s9 + $0x8] sm:$0xff] %v622_v22 }
 0x226   : > { %850 = shalt.err (!%p847_p7)
}
 0x227   : > { %s851_s23 = scalar_lea.hbm %s1172_s13, 256  ;;  %s855_s30 = scalar_lea.hbm %s1219_s5, 512 }
 0x228   : > { %p852_p8 = scmp.ne.s32.totalorder %s1172_s13, %s851_s23  ;;  %p856_p1 = scmp.lt.u32.totalorder %s1172_s13, %s1219_s5 }
 0x229   : > { %p857_p0 = scmp.lt.u32.totalorder %s855_s30, %s851_s23  ;;  %p859_p6 = scmp.lt.u32.totalorder %s851_s23, %s1172_s13 }
 0x22a   : > { %p853_p11 = pnand %p852_p8, %p1238_p9 }
 0x22b   : > { %p858_p5 = por %p857_p0, %p856_p1 }
 0x22c   : > { %p854_p13 = pneg %p853_p11 }
 0x22d   : > { %p860_p10 = por %p859_p6, %p858_p5 }
 0x22f   : > { %p861_p12 = pnand %p860_p10, %p854_p13 }
 0x231   : > { %864 = shalt.err (!%p861_p12)
}
 0x232   : > { %733 = dma.vmem_to_hbm [thread:$0]  (%p1238_p9), %s1174_s10, 256, %s1172_s13, %s626_s14  }
 0x233 PF: > { %p745_p2 = scmp.ge.s32.totalorder %s903_s21, 2  ;;  %s652_s8 = sand.u32 1, %s891_s18  }
 0x234   : > { %p1239_p3 = scmp.ne.s32.totalorder %s1224_s29, 0  ;;  %s653_s9 = scalar_lea.sflag [#allocation4], %s652_s8 }
 0x236   : > { %p740_p4 = pnand %p745_p2, %p1239_p3 }
 0x238   : > { %886 = dma.done.wait (!%p740_p4), %s653_s9, 256  }
 0x239   : > { %888 = vsyncadd (!%p740_p4), %s653_s9, 4294967040  ;;  %p16_p7 = scmp.ge.s32.totalorder %s981_s24, 4   ;;  %s1240_s18 = smov %s895_s19 }
 0x23a   : > { %s1241_s19 = smov %s899_s20  ;;  %s1242_s20 = smov %s992_s27 }
 0x23b   : > { %s1243_s21 = smov %s981_s24  ;;  %18 = sbr.rel (!%p16_p7) target bundleno = 4 (0x4), region = 80 }
 0x242   :  { %658 = vsyncpa [#allocation3], 1 }
 0x243   :  { %660 = vsyncpa [#allocation3 + $0x1], 1 }
 0x244   :  { %661 = vsyncpa [#allocation4], 1 }
 0x245   :  { %663 = vsyncpa [#allocation4 + $0x1], 1 }

</bundles_post_ra>
